<compile_context>
chip_gen: v5e
topology: v5e:2x2
jax: 0.10.0
libtpu: 0.0.40
codegen_flags: <defaults>
</compile_context>

<pallas_src>
import functools

import jax
import jax.numpy as jnp
from jax.experimental import pallas as pl
from jax.experimental.pallas import tpu as pltpu


# ----------------------------- Pallas kernel ---------------------------------


def _ssn_eval_kernel(x_ref, w1t_ref, b1_ref, w2s_ref, b2_ref, o_ref):
    """Fused deter-eval SSN forward, feature-major layout, single grid step.

    x_ref   : VMEM [C, B*P]        input (channels in sublanes, batch*spatial in lanes)
    w1t_ref : VMEM [K*CMID, C]     layer-1 candidate weights, concatenated + transposed
    b1_ref  : VMEM [K*CMID, 1]     layer-1 biases (column)
    w2s_ref : VMEM [COUT, K*CMID]  layer-2 weights with BOTH arch gates folded in
    b2_ref  : VMEM [COUT, 1]       layer-2 bias with layer-2 gates folded in
    o_ref   : VMEM [COUT, B]       pooled output (transposed; wrapper returns .T)
    """
    c_in = x_ref.shape[0]
    b = o_ref.shape[1]
    p = x_ref.shape[1] // b
    inv_p = 1.0 / p

    # x is the only large operand; it may arrive as bf16 (bandwidth) -> upcast, keep math f32.
    x = x_ref[...].astype(jnp.float32)                       # [C, B*P], lane-dense
    w1t = w1t_ref[...]                                       # [K*CMID, C]

    # ---- layer 1: C (=4) broadcast FMAs on the VPU (contraction too shallow for the MXU) ----
    y = w1t[:, 0:1] * x[0:1, :]                              # outer-product broadcast -> [K*CMID, B*P]
    for cc in range(1, c_in):
        y = y + w1t[:, cc:cc + 1] * x[cc:cc + 1, :]
    y = jnp.maximum(y + b1_ref[...], 0.0)                    # bias broadcast over lanes + ReLU

    # ---- global average pool, per batch element, over aligned 128-multiple lane blocks ----
    # Gates are constant over P, so pooling commutes in front of all gating; layer 2 is affine
    # so it also commutes in front of layer 2. For large B, replace this unrolled loop with a
    # [B*P, B] 1/P pooling-matrix matmul on the MXU.
    cols = [jnp.sum(y[:, bb * p:(bb + 1) * p], axis=1, keepdims=True) * inv_p
            for bb in range(b)]
    hp = jnp.concatenate(cols, axis=1) if b > 1 else cols[0]  # [K*CMID, B]

    # ---- layer 2 with both arch gates pre-folded into the weights: one tiny MXU matmul ----
    out = jnp.dot(w2s_ref[...], hp, preferred_element_type=jnp.float32) + b2_ref[...]
    o_ref[...] = out                                          # single contiguous [COUT, B] store


def ssn_eval_forward_pallas(x_t, w1t, b1c, w2s, b2c, *, batch):
    """x_t: [C, B*P] (f32 or bf16); weights f32.  Returns [COUT, B]."""
    c_in, bp = x_t.shape
    km = w1t.shape[0]
    c_out = w2s.shape[0]

    return pl.pallas_call(
        _ssn_eval_kernel,
        out_shape=jax.ShapeDtypeStruct((c_out, batch), jnp.float32),
        grid=(1,),  # whole forward in one step; tile the B*P lane axis only once it is large
        in_specs=[
            pl.BlockSpec((c_in, bp), lambda i: (0, 0)),
            pl.BlockSpec((km, c_in), lambda i: (0, 0)),
            pl.BlockSpec((km, 1), lambda i: (0, 0)),
            pl.BlockSpec((c_out, km), lambda i: (0, 0)),
            pl.BlockSpec((c_out, 1), lambda i: (0, 0)),
        ],
        out_specs=pl.BlockSpec((c_out, batch), lambda i: (0, 0)),
        # At these sizes default scoped VMEM is ample; when scaling B*P/CMID set
        # vmem_limit_bytes explicitly (64 MiB physical on v7x, 128 MiB on v5e/v6e).
        compiler_params=pltpu.CompilerParams(dimension_semantics=("arbitrary",)),
    )(x_t, w1t, b1c, w2s, b2c)


@functools.partial(jax.jit, static_argnames=("input_dtype",))
def ssn_eval_forward(x_nchw, w1t, b1c, w2s, b2c, *, input_dtype=jnp.float32):
    """End-to-end jitted forward: NCHW -> feature-major -> kernel -> [B, COUT]."""
    B, C, H, W = x_nchw.shape
    # NCHW -> [C, B*H*W]: a leading-dim permute only (no NHWC transpose, no jnp.repeat).
    x_t = jnp.transpose(x_nchw, (1, 0, 2, 3)).reshape(C, B * H * W).astype(input_dtype)
    out_t = ssn_eval_forward_pallas(x_t, w1t, b1c, w2s, b2c, batch=B)
    return out_t.T  # 16-element transpose, fused under jit


# --------------------------- SSNWrapper (JAX side) ----------------------------


class SSNWrapperPallas:
    """JAX/Pallas re-implementation of SSNWrapper.forward (deterministic eval path)."""

    N_LAYERS = 2   # stochastic layers
    K = 2          # candidate ops per layer
    C_IN = 4
    C_MID = 32
    C_OUT = 8

    def __init__(self, initial_p=0.5, t_id=0, key=jax.random.PRNGKey(0)):
        self.t_id = t_id
        self.initial_p = initial_p
        n_nodes = self.N_LAYERS * self.K  # stochastic_node_ids: {(t_id, layer, op): pos}
        self.stochastic_node_ids = {
            (t_id, l, k): l * self.K + k
            for l in range(self.N_LAYERS) for k in range(self.K)
        }
        self.weight_mask = jnp.ones((n_nodes,), jnp.float32)  # parity with loss_wrapper

        # arch sampler ("layer_softmax"): one logit per stochastic node, deterministic init.
        base = jnp.log(jnp.asarray(initial_p, jnp.float32))
        self.arch_logits = base + 0.1 * jnp.arange(n_nodes, dtype=jnp.float32)

        # SSN parameters (deterministic init from the PRNG key)
        k1, k2, k3, k4 = jax.random.split(key, 4)
        self.w1 = 0.1 * jax.random.normal(k1, (self.K, self.C_IN, self.C_MID), jnp.float32)
        self.b1 = 0.1 * jax.random.normal(k2, (self.K, self.C_MID), jnp.float32)
        self.w2 = 0.1 * jax.random.normal(k3, (self.K, self.C_MID, self.C_OUT), jnp.float32)
        self.b2 = 0.1 * jax.random.normal(k4, (self.K, self.C_OUT), jnp.float32)

        # Fold everything input-independent ONCE (no per-call host glue).
        self._fold_eval_params()

    # SoftmaxArchGenerator with groups == layer id ("layer_softmax")
    def arch_probas(self):
        logits = self.arch_logits.reshape(self.N_LAYERS, self.K)
        return jax.nn.softmax(logits, axis=-1).reshape(-1)  # [2K]

    # deter_eval=True eval path: samplings are the probas, broadcast over batch
    def sample_archs(self, b_size, probas):
        return jnp.broadcast_to(probas[None, :], (b_size, probas.shape[0]))

    def _fold_eval_params(self):
        """Deter-eval fold: gates are batch-uniform, so bake them into the weights."""
        K, CMID, COUT, CIN = self.K, self.C_MID, self.C_OUT, self.C_IN
        probas = self.arch_probas()
        g1, g2 = probas[:K], probas[K:]
        # layer-1 candidates concatenated + transposed to feature-major [K*CMID, C]
        self.w1t = jnp.transpose(self.w1, (0, 2, 1)).reshape(K * CMID, CIN)
        self.b1c = self.b1.reshape(K * CMID, 1)
        # layer-2 gates folded: W2_eff = sum_k g2_k W2_k (same for the bias)
        w2_eff = jnp.einsum("k,kmo->mo", g2, self.w2)                        # [CMID, COUT]
        b2_eff = jnp.einsum("k,ko->o", g2, self.b2)                          # [COUT]
        # layer-1 gates folded into the stacked layer-2 weight (valid: gates batch-uniform)
        w2_stack = (g1[:, None, None] * w2_eff[None, :, :]).reshape(K * CMID, COUT)
        self.w2s = w2_stack.T                                                # [COUT, K*CMID]
        self.b2c = b2_eff.reshape(COUT, 1)
        # TODO(synk): training / sampled path needs per-batch gates — use a kernel variant
        # that takes [B, K] gate inputs and applies them AFTER the pooling (still tiny).

    def forward(self, inputs_nchw, *, input_dtype=jnp.float32):
        # arch_probas / sample_archs are already folded into w2s/b2c (deter_eval path);
        # the kernel is the pure matmul-relu-pool-matmul forward of ssn(inputs).
        return ssn_eval_forward(inputs_nchw, self.w1t, self.b1c, self.w2s, self.b2c,
                                input_dtype=input_dtype)  # [B, C_OUT]

    # pure-JAX, un-folded reference for validation (mirrors the PyTorch module math)
    def forward_ref(self, inputs_nchw):
        B, C, H, W = inputs_nchw.shape
        x = jnp.transpose(inputs_nchw, (0, 2, 3, 1)).reshape(B, H * W, C).astype(jnp.float32)
        s = self.sample_archs(B, self.arch_probas())  # [B, 2K]
        h = jnp.zeros((B, H * W, self.C_MID), jnp.float32)
        for k in range(self.K):
            y = jnp.maximum(jnp.einsum("bpc,cm->bpm", x, self.w1[k]) + self.b1[k], 0.0)
            h = h + s[:, k][:, None, None] * y
        o = jnp.zeros((B, H * W, self.C_OUT), jnp.float32)
        for k in range(self.K):
            z = jnp.einsum("bpm,mo->bpo", h, self.w2[k]) + self.b2[k]
            o = o + s[:, self.K + k][:, None, None] * z
        return jnp.mean(o, axis=1)


# ----------------------------------- main -------------------------------------

if __name__ == "__main__":
    key = jax.random.PRNGKey(0)
    k_in, k_params = jax.random.split(key)

    # small shapes consistent with the module: batch=2, channels=4, spatial=16x16 (NCHW)
    x = jax.random.normal(k_in, (2, 4, 16, 16), jnp.float32)

    wrapper = SSNWrapperPallas(initial_p=0.5, t_id=0, key=k_params)

    # f32 path: bit-for-bit semantics check against the un-folded reference
    out = jax.block_until_ready(wrapper.forward(x))
    ref = wrapper.forward_ref(x)
    assert out.shape == (2, SSNWrapperPallas.C_OUT)
    assert jnp.allclose(out, ref, atol=1e-4, rtol=1e-4), (out, ref)

    # bf16 x-stream path (halves HBM->VMEM bytes of the dominant operand; math stays f32)
    out_bf16 = jax.block_until_ready(wrapper.forward(x, input_dtype=jnp.bfloat16))
    assert jnp.allclose(out_bf16, ref, atol=3e-2, rtol=3e-2), (out_bf16, ref)

    # TODO(synk): loss_wrapper / freeze_arch / check_arch_freezing / train_loader_wrapper
    # (REINFORCE arch loss, graph pruning, split training) are training-time host logic
    # with no kernel hot path.
    print("KERNEL_OK")
</pallas_src>

<mosaic_0001>
module attributes {stable_mosaic.version = 11 : i64} {
  func.func @_ssn_eval_kernel(%arg0: i32, %arg1: memref<4x512xf32, #tpu.memory_space<vmem>>, %arg2: memref<64x4xf32, #tpu.memory_space<vmem>>, %arg3: memref<64x1xf32, #tpu.memory_space<vmem>>, %arg4: memref<8x64xf32, #tpu.memory_space<vmem>>, %arg5: memref<8x1xf32, #tpu.memory_space<vmem>>, %arg6: memref<8x2xf32, #tpu.memory_space<vmem>>) attributes {dimension_semantics = [#tpu.dimension_semantics<arbitrary>], iteration_bounds = array<i64: 1>, scalar_prefetch = 0 : i64, scratch_operands = 0 : i64, tpu.core_type = #tpu.core_type<tc>, window_params = [{pipeline_mode = #tpu.pipeline_mode<synchronous>, transform_indices = @transform_0, window_bounds = array<i64: 4, 512>}, {pipeline_mode = #tpu.pipeline_mode<synchronous>, transform_indices = @transform_1, window_bounds = array<i64: 64, 4>}, {pipeline_mode = #tpu.pipeline_mode<synchronous>, transform_indices = @transform_2, window_bounds = array<i64: 64, 1>}, {pipeline_mode = #tpu.pipeline_mode<synchronous>, transform_indices = @transform_3, window_bounds = array<i64: 8, 64>}, {pipeline_mode = #tpu.pipeline_mode<synchronous>, transform_indices = @transform_4, window_bounds = array<i64: 8, 1>}, {pipeline_mode = #tpu.pipeline_mode<synchronous>, transform_indices = @transform_5, window_bounds = array<i64: 8, 2>}]} {
    %c0 = arith.constant 0 : index
    %c0_0 = arith.constant 0 : index
    %0 = vector.load %arg1[%c0, %c0_0] : memref<4x512xf32, #tpu.memory_space<vmem>>, vector<4x512xf32>
    %c0_1 = arith.constant 0 : index
    %c0_2 = arith.constant 0 : index
    %1 = vector.load %arg2[%c0_1, %c0_2] : memref<64x4xf32, #tpu.memory_space<vmem>>, vector<64x4xf32>
    %2 = vector.extract_strided_slice %1 {offsets = [0, 0], sizes = [64, 1], strides = [1, 1]} : vector<64x4xf32> to vector<64x1xf32>
    %3 = vector.extract_strided_slice %0 {offsets = [0, 0], sizes = [1, 512], strides = [1, 1]} : vector<4x512xf32> to vector<1x512xf32>
    %4 = vector.broadcast %2 : vector<64x1xf32> to vector<64x512xf32>
    %5 = vector.broadcast %3 : vector<1x512xf32> to vector<64x512xf32>
    %6 = arith.mulf %4, %5 : vector<64x512xf32>
    %7 = vector.extract_strided_slice %1 {offsets = [0, 1], sizes = [64, 1], strides = [1, 1]} : vector<64x4xf32> to vector<64x1xf32>
    %8 = vector.extract_strided_slice %0 {offsets = [1, 0], sizes = [1, 512], strides = [1, 1]} : vector<4x512xf32> to vector<1x512xf32>
    %9 = vector.broadcast %7 : vector<64x1xf32> to vector<64x512xf32>
    %10 = vector.broadcast %8 : vector<1x512xf32> to vector<64x512xf32>
    %11 = arith.mulf %9, %10 : vector<64x512xf32>
    %12 = arith.addf %6, %11 : vector<64x512xf32>
    %13 = vector.extract_strided_slice %1 {offsets = [0, 2], sizes = [64, 1], strides = [1, 1]} : vector<64x4xf32> to vector<64x1xf32>
    %14 = vector.extract_strided_slice %0 {offsets = [2, 0], sizes = [1, 512], strides = [1, 1]} : vector<4x512xf32> to vector<1x512xf32>
    %15 = vector.broadcast %13 : vector<64x1xf32> to vector<64x512xf32>
    %16 = vector.broadcast %14 : vector<1x512xf32> to vector<64x512xf32>
    %17 = arith.mulf %15, %16 : vector<64x512xf32>
    %18 = arith.addf %12, %17 : vector<64x512xf32>
    %19 = vector.extract_strided_slice %1 {offsets = [0, 3], sizes = [64, 1], strides = [1, 1]} : vector<64x4xf32> to vector<64x1xf32>
    %20 = vector.extract_strided_slice %0 {offsets = [3, 0], sizes = [1, 512], strides = [1, 1]} : vector<4x512xf32> to vector<1x512xf32>
    %21 = vector.broadcast %19 : vector<64x1xf32> to vector<64x512xf32>
    %22 = vector.broadcast %20 : vector<1x512xf32> to vector<64x512xf32>
    %23 = arith.mulf %21, %22 : vector<64x512xf32>
    %24 = arith.addf %18, %23 : vector<64x512xf32>
    %c0_3 = arith.constant 0 : index
    %c0_4 = arith.constant 0 : index
    %25 = vector.load %arg3[%c0_3, %c0_4] : memref<64x1xf32, #tpu.memory_space<vmem>>, vector<64x1xf32>
    %26 = vector.broadcast %25 : vector<64x1xf32> to vector<64x512xf32>
    %27 = arith.addf %24, %26 : vector<64x512xf32>
    %cst = arith.constant 0.000000e+00 : f32
    %28 = vector.broadcast %cst : f32 to vector<64x512xf32>
    %29 = arith.maximumf %27, %28 : vector<64x512xf32>
    %30 = vector.extract_strided_slice %29 {offsets = [0, 0], sizes = [64, 256], strides = [1, 1]} : vector<64x512xf32> to vector<64x256xf32>
    %cst_5 = arith.constant dense<0.000000e+00> : vector<64xf32>
    %31 = vector.multi_reduction <add>, %30, %cst_5 [1] : vector<64x256xf32> to vector<64xf32>
    %32 = vector.shape_cast %31 : vector<64xf32> to vector<64x1xf32>
    %cst_6 = arith.constant 3.906250e-03 : f32
    %33 = vector.broadcast %cst_6 : f32 to vector<64x1xf32>
    %34 = arith.mulf %32, %33 : vector<64x1xf32>
    %35 = vector.extract_strided_slice %29 {offsets = [0, 256], sizes = [64, 256], strides = [1, 1]} : vector<64x512xf32> to vector<64x256xf32>
    %cst_7 = arith.constant dense<0.000000e+00> : vector<64xf32>
    %36 = vector.multi_reduction <add>, %35, %cst_7 [1] : vector<64x256xf32> to vector<64xf32>
    %37 = vector.shape_cast %36 : vector<64xf32> to vector<64x1xf32>
    %cst_8 = arith.constant 3.906250e-03 : f32
    %38 = vector.broadcast %cst_8 : f32 to vector<64x1xf32>
    %39 = arith.mulf %37, %38 : vector<64x1xf32>
    %40 = tpu.concatenate %34, %39 in 1 : vector<64x1xf32>, vector<64x1xf32> -> vector<64x2xf32>
    %c0_9 = arith.constant 0 : index
    %c0_10 = arith.constant 0 : index
    %41 = vector.load %arg4[%c0_9, %c0_10] : memref<8x64xf32, #tpu.memory_space<vmem>>, vector<8x64xf32>
    %cst_11 = arith.constant dense<0.000000e+00> : vector<8x2xf32>
    %42 = tpu.matmul %41, %40, %cst_11 {dimension_numbers = #tpu.dot_dimension_numbers<[1], [0], [0], [1], [0, 0, 1, 1], [], []>} : vector<8x64xf32>, vector<64x2xf32>, vector<8x2xf32> -> vector<8x2xf32>
    %c0_12 = arith.constant 0 : index
    %c0_13 = arith.constant 0 : index
    %43 = vector.load %arg5[%c0_12, %c0_13] : memref<8x1xf32, #tpu.memory_space<vmem>>, vector<8x1xf32>
    %44 = vector.broadcast %43 : vector<8x1xf32> to vector<8x2xf32>
    %45 = arith.addf %42, %44 : vector<8x2xf32>
    %c0_14 = arith.constant 0 : index
    %c0_15 = arith.constant 0 : index
    %46 = vector.load %arg6[%c0_14, %c0_15] : memref<8x2xf32, #tpu.memory_space<vmem>>, vector<8x2xf32>
    tpu.vector_store %arg6[%c0_14, %c0_15], %45 {strides = array<i32>} : memref<8x2xf32, #tpu.memory_space<vmem>>, vector<8x2xf32>,
    return
  }
  func.func @transform_0(%arg0: i32) -> (i32, i32) {
    %c0_i32 = arith.constant 0 : i32
    %c0_i32_0 = arith.constant 0 : i32
    %c0_i32_1 = arith.constant 0 : i32
    return %c0_i32, %c0_i32_0 : i32, i32
  }
  func.func @transform_1(%arg0: i32) -> (i32, i32) {
    %c0_i32 = arith.constant 0 : i32
    %c0_i32_0 = arith.constant 0 : i32
    %c0_i32_1 = arith.constant 0 : i32
    return %c0_i32, %c0_i32_0 : i32, i32
  }
  func.func @transform_2(%arg0: i32) -> (i32, i32) {
    %c0_i32 = arith.constant 0 : i32
    %c0_i32_0 = arith.constant 0 : i32
    %c0_i32_1 = arith.constant 0 : i32
    return %c0_i32, %c0_i32_0 : i32, i32
  }
  func.func @transform_3(%arg0: i32) -> (i32, i32) {
    %c0_i32 = arith.constant 0 : i32
    %c0_i32_0 = arith.constant 0 : i32
    %c0_i32_1 = arith.constant 0 : i32
    return %c0_i32, %c0_i32_0 : i32, i32
  }
  func.func @transform_4(%arg0: i32) -> (i32, i32) {
    %c0_i32 = arith.constant 0 : i32
    %c0_i32_0 = arith.constant 0 : i32
    %c0_i32_1 = arith.constant 0 : i32
    return %c0_i32, %c0_i32_0 : i32, i32
  }
  func.func @transform_5(%arg0: i32) -> (i32, i32) {
    %c0_i32 = arith.constant 0 : i32
    %c0_i32_0 = arith.constant 0 : i32
    %c0_i32_1 = arith.constant 0 : i32
    return %c0_i32, %c0_i32_0 : i32, i32
  }
}

</mosaic_0001>

<bundles_post_ra>
// kernel: ssn_eval_forward.1
= control target key start
LH: loop header
LB: loop body
LE: loop exit
PB: predicated region body
PF: predicated region fallthrough
CT: control target
= control target key end

     0   :  { %v685_v0 = vmov 1   ;;  %v686_v1 = vmov 0   ;;  %v687_v10 = vmov 3   ;;  %v688_v11 = vmov 2   ;;  %s1196_s1 = inlined_call_operand.vmem [shape: f32[64,4], index: 1, kind: input, shape index: {}]   ;;  %s1197_s2 = inlined_call_operand.vmem [shape: f32[64,1], index: 2, kind: input, shape index: {}]   ;;  %s1198_s0 = inlined_call_operand.vmem [shape: f32[4,512], index: 0, kind: input, shape index: {}]   ;;  %s1199_s4 = inlined_call_operand.vmem [shape: f32[8,1], index: 4, kind: input, shape index: {}]   ;;  %s1200_s3 = inlined_call_operand.vmem [shape: f32[8,64], index: 3, kind: input, shape index: {}]   ;;  %s1201_s5 = inlined_call_operand.vmem [shape: f32[8,2], index: 5, kind: output, shape index: {}]  }
   0x1   :  { %670 = vset.pattern.permute.xlu0 %v685_v0  ;;  %668 = vset.pattern.permute.xlu2 %v686_v1  ;;  %v26_v2 = vld [vmem:[%s1196_s1 + $0x20] sm:$0xff]  ;;  %v24_v3 = vld [vmem:[%s1196_s1 + $0x10] sm:$0xff]  ;;  %v729_v4 = vld [vmem:[%s1196_s1 + $0x8] sm:$0xff]  ;;  %vm616_vm0 = vcmask 7168   ;;  %vm632_vm1 = vcmask 523264   ;;  %vm656_vm2 = vcmask 15360  }
   0x2   :  { %667 = vset.pattern.permute.xlu1 %v686_v1  ;;  %52 = vperm.xlu2 %668, %v26_v2   ;;  %v27_v5 = vld [vmem:[%s1196_s1 + $0x28] sm:$0xff]  ;;  %v25_v6 = vld [vmem:[%s1196_s1 + $0x18] sm:$0xff]  ;;  %v28_v7 = vld [vmem:[%s1196_s1 + $0x30] sm:$0xff] }
   0x3   :  { %42 = vperm.xlu1 %667, %v24_v3   ;;  %121 = vperm.xlu0 %670, %v729_v4   ;;  %v29_v8 = vld [vmem:[%s1196_s1 + $0x38] sm:$0xff]  ;;  %v22_v9 = vld [vmem:[%s1196_s1] sm:$0xff]  ;;  %v442_v14 = vld [vmem:[%s1197_s2 + $0x10] sm:$0xff] }
   0x4   :  { %v444_v12 = vld [vmem:[%s1197_s2 + $0x20] sm:$0xff]  ;;  %v447_v13 = vld [vmem:[%s1197_s2 + $0x38] sm:$0xff]  ;;  %v446_v15 = vld [vmem:[%s1197_s2 + $0x30] sm:$0xff] }
   0x5   :  { %v445_v16 = vld [vmem:[%s1197_s2 + $0x28] sm:$0xff]  ;;  %v443_v20 = vld [vmem:[%s1197_s2 + $0x18] sm:$0xff]  ;;  %v782_v21 = vld [vmem:[%s1198_s0] sm:$0xff] }
   0x6   :  { %v787_v22 = vld [vmem:[%s1198_s0 + $0x8] sm:$0xff]  ;;  %v148_v23 = vperm.slane %v782_v21, 1  ;;  %v149_v24 = vperm.slane %v782_v21, 5  ;;  %v440_v29 = vld [vmem:[%s1197_s2] sm:$0xff]  ;;  %v72_v30 = vperm.slane %v782_v21, 0  ;;  %v73_v31 = vperm.slane %v782_v21, 4 }
   0x7   :  { %v150_v25 = vperm.slane %v787_v22, 1  ;;  %v151_v26 = vperm.slane %v787_v22, 5  ;;  %v74_v32 = vperm.slane %v787_v22, 0  ;;  %v75_v33 = vperm.slane %v787_v22, 4  ;;  %v441_v39 = vld [vmem:[%s1197_s2 + $0x8] sm:$0xff] }
   0x8   :  { %v804_v35 = vperm.slane %v148_v23, 1  ;;  %v806_v36 = vperm.slane %v149_v24, 1  ;;  %v816_v40 = vperm.slane %v72_v30, 0  ;;  %v818_v41 = vperm.slane %v73_v31, 0 }
   0x9   :  { %v808_v37 = vperm.slane %v150_v25, 1  ;;  %v810_v38 = vperm.slane %v151_v26, 1  ;;  %v820_v42 = vperm.slane %v74_v32, 0  ;;  %v822_v43 = vperm.slane %v75_v33, 0 }
   0xa   :  { %57 = vperm.xlu2 %668, %v27_v5   ;;  %v364_v23 = vperm.slane %v782_v21, 3  ;;  %v365_v24 = vperm.slane %v782_v21, 7  ;;  %v366_v25 = vperm.slane %v787_v22, 3  ;;  %v367_v26 = vperm.slane %v787_v22, 7 }
   0xb   :  { %47 = vperm.xlu1 %667, %v25_v6   ;;  %141 = vperm.xlu0 %670, %v28_v7   ;;  %1216 = vst [vmem:[#allocation3_spill] sm:$0xff] %v808_v37  ;;  %v256_v33 = vperm.slane %v782_v21, 2 }
   0xc   :  { %1217 = vst [vmem:[#allocation4_spill] sm:$0xff] %v810_v38 }
   0xd   :  { %1218 = vst [vmem:[#allocation5_spill] sm:$0xff] %v820_v42 }
   0xe   :  { %1219 = vst [vmem:[#allocation6_spill] sm:$0xff] %v822_v43 }
  0x12   :  { %669 = vset.pattern.permute.xlu2 %v685_v0 }
  0x13   :  { %67 = vperm.xlu1 %667, %v29_v8   ;;  %675 = vset.pattern.permute.xlu0 %v687_v10 }
  0x14   :  { %353 = vperm.xlu0 %675, %v27_v5   ;;  %117 = vperm.xlu2 %669, %v22_v9  }
  0x1b   :  { %671 = vset.pattern.permute.xlu1 %v685_v0 }
  0x1c   :  { %125 = vperm.xlu1 %671, %v24_v3   ;;  %676 = vset.pattern.permute.xlu0 %v688_v11 }
  0x1d   :  { %129 = vperm.xlu2 %669, %v25_v6   ;;  %249 = vperm.xlu0 %676, %v28_v7  }
  0x24   :  { %133 = vperm.xlu1 %671, %v26_v2  }
  0x25   :  { %145 = vperm.xlu2 %669, %v29_v8   ;;  %233 = vperm.xlu0 %676, %v24_v3  }
  0x2c   :  { %672 = vset.pattern.permute.xlu1 %v688_v11 }
  0x2d   :  { %137 = vperm.xlu2 %669, %v27_v5   ;;  %253 = vperm.xlu1 %672, %v29_v8  }
  0x2e   :  { %680 = vset.pattern.permute.xlu0 %v686_v1 }
  0x2f   :  { %32 = vperm.xlu0 %680, %v22_v9  }
  0x35   :  { %674 = vset.pattern.permute.xlu2 %v688_v11  ;;  %673 = vset.pattern.permute.xlu1 %v687_v10 }
  0x36   :  { %245 = vperm.xlu2 %674, %v27_v5   ;;  %361 = vperm.xlu1 %673, %v29_v8   ;;  %v259_v8 = vperm.slane %v787_v22, 6 }
  0x37   :  { %37 = vperm.xlu0 %680, %v729_v4  }
  0x3e   :  { %241 = vperm.xlu2 %674, %v26_v2   ;;  %357 = vperm.xlu1 %673, %v28_v7  }
  0x3f   :  { %62 = vperm.xlu0 %680, %v28_v7   ;;  %v258_v7 = vperm.slane %v787_v22, 2  ;;  %v257_v22 = vperm.slane %v782_v21, 6 }
  0x46   :  { %237 = vperm.xlu2 %674, %v25_v6   ;;  %677 = vset.pattern.permute.xlu1 %v686_v1 }
  0x47   :  { %470 = vperm.xlu0 %680, %v444_v12   ;;  %485 = vperm.xlu1 %677, %v447_v13  }
  0x4e   :  { %679 = vset.pattern.permute.xlu2 %v686_v1 }
  0x4f   :  { %460 = vperm.xlu0 %680, %v442_v14   ;;  %480 = vperm.xlu2 %679, %v446_v15  }
  0x50   :  { %678 = vset.pattern.permute.xlu1 %v687_v10 }
  0x51   :  { %349 = vperm.xlu1 %678, %v26_v2  }
  0x57   :  { %475 = vperm.xlu2 %679, %v445_v16  }
  0x59   :  { %345 = vperm.xlu1 %678, %v25_v6  }
  0x5c   :  { %v767_v17 = vpop.permute.xlu2 %52 }
  0x5d   :  { %v892_v30 = vmul.f32 %v818_v41, %v767_v17  ;;  %v896_v31 = vmul.f32 %v820_v42, %v767_v17  ;;  %v900_v32 = vmul.f32 %v822_v43, %v767_v17 }
  0x5f   :  { %682 = vset.pattern.permute.xlu2 %v687_v10  ;;  %v866_v10 = vperm.slane %v259_v8, 2 }
  0x60   :  { %341 = vperm.xlu2 %682, %v24_v3  }
  0x61   :  { %681 = vset.pattern.permute.xlu1 %v688_v11 }
  0x62   :  { %229 = vperm.xlu1 %681, %v729_v4  }
  0x64   :  { %v770_v18 = vpop.permute.xlu2 %57 }
  0x68   :  { %337 = vperm.xlu2 %682, %v729_v4  }
  0x6a   :  { %225 = vperm.xlu1 %681, %v22_v9  }
  0x6e   :  { %v773_v19 = vpop.permute.xlu2 %117 }
  0x70   :  { %333 = vperm.xlu2 %682, %v22_v9   ;;  %v864_v9 = vperm.slane %v258_v7, 2 }
  0x72   :  { %683 = vset.pattern.permute.xlu1 %v686_v1 }
  0x73   :  { %465 = vperm.xlu1 %683, %v443_v20  }
  0x75   :  { %v793_v27 = vpop.permute.xlu1 %42  ;;  %v795_v28 = vpop.permute.xlu0 %121 }
  0x76   :  { %1215 = vst [vmem:[#allocation2_spill] sm:$0xff] %v795_v28  ;;  %v94_v63 = vmul.f32 %v820_v42, %v793_v27  ;;  %v95_v0 = vmul.f32 %v822_v43, %v793_v27 }
  0x77   :  { %v130_v34 = vpop.permute.xlu2 %129 }
  0x78   :  { %684 = vset.pattern.permute.xlu2 %v686_v1  ;;  %v172_v44 = vmul.f32 %v804_v35, %v130_v34  ;;  %v173_v45 = vmul.f32 %v806_v36, %v130_v34  ;;  %v174_v46 = vmul.f32 %v808_v37, %v130_v34  ;;  %v175_v47 = vmul.f32 %v810_v38, %v130_v34 }
  0x79   :  { %450 = vperm.xlu2 %684, %v440_v29   ;;  %v888_v29 = vmul.f32 %v816_v40, %v767_v17  ;;  %v104_v34 = vmul.f32 %v816_v40, %v770_v18  ;;  %v914_v17 = vperm.slane %v365_v24, 3 }
  0x7b   :  { %455 = vperm.xlu1 %683, %v441_v39   ;;  %v105_v39 = vmul.f32 %v818_v41, %v770_v18 }
  0x7d   :  { %v48_v48 = vpop.permute.xlu1 %47  ;;  %v828_v49 = vpop.permute.xlu0 %141 }
  0x7e   :  { %v96_v50 = vmul.f32 %v816_v40, %v48_v48  ;;  %v97_v51 = vmul.f32 %v818_v41, %v48_v48  ;;  %v98_v52 = vmul.f32 %v820_v42, %v48_v48  ;;  %v99_v53 = vmul.f32 %v822_v43, %v48_v48 }
  0x7f   :  { %v146_v54 = vpop.permute.xlu2 %145  ;;  %v918_v48 = vperm.slane %v367_v26, 3  ;;  %v952_v8 = vmul.f32 %v810_v38, %v828_v49 }
  0x80   :  { %v834_v55 = vadd.f32 %v172_v44, %v96_v50  ;;  %v836_v56 = vadd.f32 %v173_v45, %v97_v51  ;;  %v838_v57 = vadd.f32 %v174_v46, %v98_v52  ;;  %v840_v58 = vadd.f32 %v175_v47, %v99_v53 }
  0x81   :  { %v106_v44 = vmul.f32 %v820_v42, %v770_v18  ;;  %v107_v45 = vmul.f32 %v822_v43, %v770_v18  ;;  %v912_v46 = vperm.slane %v364_v23, 3  ;;  %v916_v47 = vperm.slane %v366_v25, 3 }
  0x82   :  { %1220 = vst [vmem:[#allocation7_spill] sm:$0xff] %v834_v55  ;;  %v160_v50 = vmul.f32 %v804_v35, %v773_v19  ;;  %v161_v51 = vmul.f32 %v806_v36, %v773_v19  ;;  %v162_v52 = vmul.f32 %v808_v37, %v773_v19  ;;  %v163_v18 = vmul.f32 %v810_v38, %v773_v19 }
  0x83   :  { %1221 = vst [vmem:[#allocation8_spill] sm:$0xff] %v836_v56  ;;  %v189_v7 = vmul.f32 %v806_v36, %v146_v54  ;;  %v948_v19 = vmul.f32 %v808_v37, %v828_v49 }
  0x84   :  { %1222 = vst [vmem:[#allocation9_spill] sm:$0xff] %v838_v57 }
  0x85   :  { %1223 = vst [vmem:[#allocation10_spill] sm:$0xff] %v840_v58  ;;  %v842_v59 = vpop.permute.xlu1 %67 }
  0x86   :  { %v844_v60 = vpop.permute.xlu0 %353 }
  0x87   :  { %v846_v61 = vpop.permute.xlu2 %137 }
  0x88   :  { %v182_v23 = vmul.f32 %v808_v37, %v846_v61  ;;  %v183_v24 = vmul.f32 %v810_v38, %v846_v61 }
  0x8e   :  { %v848_v62 = vpop.permute.xlu1 %125 }
  0x8f   :  { %1224 = vst [vmem:[#allocation11_spill] sm:$0xff] %v848_v62  ;;  %v170_v1 = vmul.f32 %v808_v37, %v848_v62  ;;  %v171_v2 = vmul.f32 %v810_v38, %v848_v62  ;;  %v858_v3 = vpop.permute.xlu0 %249 }
  0x90   :  { %v860_v4 = vpop.permute.xlu2 %245 }
  0x91   :  { %v202_v5 = vadd.f32 %v170_v1, %v94_v63  ;;  %v203_v6 = vadd.f32 %v171_v2, %v95_v0  ;;  %v934_v63 = vmul.f32 %v804_v35, %v828_v49  ;;  %v938_v0 = vmul.f32 %v806_v36, %v828_v49 }
  0x92   :  { %v940_v1 = vperm.slane %v256_v33, 2  ;;  %v942_v2 = vperm.slane %v257_v22, 2  ;;  %v180_v49 = vmul.f32 %v804_v35, %v846_v61  ;;  %v290_v58 = vmul.f32 %v864_v9, %v860_v4 }
  0x93   :  { %v291_v57 = vmul.f32 %v866_v10, %v860_v4 }
  0x94   :  { %1228 = vst [vmem:[#allocation15_spill] sm:$0xff] %v942_v2  ;;  %v289_v62 = vmul.f32 %v942_v2, %v860_v4 }
  0x96   :  { %v868_v11 = vpop.permute.xlu1 %133 }
  0x97   :  { %v870_v12 = vpop.permute.xlu0 %233 }
  0x98   :  { %1225 = vst [vmem:[#allocation12_spill] sm:$0xff] %v870_v12  ;;  %v278_v13 = vmul.f32 %v864_v9, %v870_v12  ;;  %v279_v14 = vmul.f32 %v866_v10, %v870_v12  ;;  %v876_v15 = vpop.permute.xlu2 %241  ;;  %v288_v12 = vmul.f32 %v940_v1, %v860_v4 }
  0x9a   :  { %v878_v16 = vadd.f32 %v278_v13, %v202_v5  ;;  %v880_v20 = vadd.f32 %v279_v14, %v203_v6  ;;  %v188_v6 = vmul.f32 %v804_v35, %v146_v54  ;;  %v190_v13 = vmul.f32 %v808_v37, %v146_v54 }
  0x9b   :  { %v191_v14 = vmul.f32 %v810_v38, %v146_v54  ;;  %v181_v54 = vmul.f32 %v806_v36, %v846_v61  ;;  %v113_v61 = vmul.f32 %v818_v41, %v842_v59 }
  0x9c   :  { %1226 = vst [vmem:[#allocation13_spill] sm:$0xff] %v880_v20 }
  0x9f   :  { %v920_v21 = vpop.permute.xlu1 %253 }
  0xa0   :  { %v930_v53 = vpop.permute.xlu2 %237 }
  0xa1   :  { %1227 = vst [vmem:[#allocation14_spill] sm:$0xff] %v930_v53  ;;  %v33_v5 = vpop.permute.xlu0 %32 }
  0xa2   :  { %v84_v25 = vmul.f32 %v816_v40, %v33_v5  ;;  %v85_v26 = vmul.f32 %v818_v41, %v33_v5  ;;  %v86_v33 = vmul.f32 %v820_v42, %v33_v5  ;;  %v87_v22 = vmul.f32 %v822_v43, %v33_v5 }
  0xa3   :  { %v112_v5 = vmul.f32 %v816_v40, %v842_v59 }
  0xa4   :  { %v972_v56 = vadd.f32 %v160_v50, %v84_v25  ;;  %v974_v55 = vadd.f32 %v161_v51, %v85_v26  ;;  %v976_v28 = vadd.f32 %v162_v52, %v86_v33  ;;  %v978_v53 = vadd.f32 %v163_v18, %v87_v22 }
  0xa5   :  { %v114_v50 = vmul.f32 %v820_v42, %v842_v59  ;;  %v115_v51 = vmul.f32 %v822_v43, %v842_v59  ;;  %v214_v52 = vadd.f32 %v182_v23, %v106_v44  ;;  %v215_v18 = vadd.f32 %v183_v24, %v107_v45 }
  0xa6   :  { %1229 = vst [vmem:[#allocation16_spill] sm:$0xff] %v972_v56  ;;  %v212_v26 = vadd.f32 %v180_v49, %v104_v34  ;;  %v213_v33 = vadd.f32 %v181_v54, %v105_v39  ;;  %v396_v22 = vmul.f32 %v912_v46, %v844_v60  ;;  %v399_v59 = vmul.f32 %v918_v48, %v844_v60 }
  0xa7   :  { %1230 = vst [vmem:[#allocation17_spill] sm:$0xff] %v974_v55  ;;  %v398_v55 = vmul.f32 %v916_v47, %v844_v60  ;;  %v322_v44 = vadd.f32 %v290_v58, %v214_v52  ;;  %v323_v45 = vadd.f32 %v291_v57, %v215_v18  ;;  %v220_v34 = vadd.f32 %v188_v6, %v112_v5 }
  0xa8   :  { %1231 = vst [vmem:[#allocation18_spill] sm:$0xff] %v976_v28  ;;  %v362_v25 = vpop.permute.xlu1 %361  ;;  %v221_v39 = vadd.f32 %v189_v7, %v113_v61  ;;  %v320_v23 = vadd.f32 %v288_v12, %v212_v26  ;;  %v321_v24 = vadd.f32 %v289_v62, %v213_v33  ;;  %v176_v49 = vmul.f32 %v804_v35, %v868_v11 }
  0xa9   :  { %1232 = vst [vmem:[#allocation19_spill] sm:$0xff] %v978_v53  ;;  %v397_v53 = vmul.f32 %v914_v17, %v844_v60  ;;  %v996_v28 = vpop.permute.xlu0 %37  ;;  %v998_v4 = vpop.permute.xlu2 %480  ;;  %v177_v54 = vmul.f32 %v806_v36, %v868_v11  ;;  %v178_v56 = vmul.f32 %v808_v37, %v868_v11  ;;  %v222_v20 = vadd.f32 %v190_v13, %v114_v50 }
  0xaa   :  { %1233 = vst [vmem:[#allocation20_spill] sm:$0xff] %v996_v28  ;;  %v179_v28 = vmul.f32 %v810_v38, %v868_v11  ;;  %v223_v60 = vadd.f32 %v191_v14, %v115_v51  ;;  %v292_v57 = vmul.f32 %v940_v1, %v858_v3  ;;  %v293_v58 = vmul.f32 %v942_v2, %v858_v3 }
  0xab   :  { %v294_v62 = vmul.f32 %v864_v9, %v858_v3  ;;  %v295_v12 = vmul.f32 %v866_v10, %v858_v3  ;;  %v430_v6 = vadd.f32 %v398_v55, %v322_v44  ;;  %v431_v7 = vadd.f32 %v399_v59, %v323_v45 }
  0xac   :  { %v298_v5 = vmul.f32 %v864_v9, %v920_v21  ;;  %v299_v11 = vmul.f32 %v866_v10, %v920_v21  ;;  %v1024_v13 = vadd.f32 %v396_v22, %v320_v23  ;;  %v1026_v14 = vadd.f32 %v397_v53, %v321_v24 }
  0xad   :  { %v1029_v61 = vadd.f32 %v176_v49, %v888_v29  ;;  %v1032_v50 = vadd.f32 %v177_v54, %v892_v30  ;;  %v1035_v3 = vadd.f32 %v178_v56, %v896_v31  ;;  %v1038_v55 = vadd.f32 %v179_v28, %v900_v32 }
  0xae   :  { %v1042_v52 = vmul.f32 %v940_v1, %v876_v15  ;;  %v1046_v53 = vmul.f32 %v942_v2, %v876_v15  ;;  %v296_v29 = vmul.f32 %v940_v1, %v920_v21  ;;  %v297_v30 = vmul.f32 %v942_v2, %v920_v21 }
  0xaf   :  { %v330_v33 = vadd.f32 %v298_v5, %v222_v20  ;;  %v331_v22 = vadd.f32 %v299_v11, %v223_v60  ;;  %v406_v59 = vmul.f32 %v916_v47, %v362_v25  ;;  %v407_v44 = vmul.f32 %v918_v48, %v362_v25 }
  0xb0   :  { %v358_v51 = vpop.permute.xlu1 %357  ;;  %v404_v49 = vmul.f32 %v912_v46, %v362_v25  ;;  %v405_v54 = vmul.f32 %v914_v17, %v362_v25  ;;  %v328_v37 = vadd.f32 %v296_v29, %v220_v34 }
  0xb1   :  { %v63_v56 = vpop.permute.xlu0 %62  ;;  %v476_v31 = vpop.permute.xlu2 %475  ;;  %v401_v20 = vmul.f32 %v914_v17, %v358_v51 }
  0xb2   :  { %v108_v28 = vmul.f32 %v816_v40, %v63_v56  ;;  %v109_v32 = vmul.f32 %v818_v41, %v63_v56  ;;  %v110_v18 = vmul.f32 %v820_v42, %v63_v56  ;;  %v111_v26 = vmul.f32 %v822_v43, %v63_v56 }
  0xb3   :  { %v400_v56 = vmul.f32 %v912_v46, %v358_v51  ;;  %v436_v43 = vadd.f32 %v404_v49, %v328_v37  ;;  %v287_v49 = vmul.f32 %v866_v10, %v876_v15 }
  0xb4   :  { %v216_v45 = vadd.f32 %v934_v63, %v108_v28  ;;  %v217_v21 = vadd.f32 %v938_v0, %v109_v32  ;;  %v218_v23 = vadd.f32 %v948_v19, %v110_v18  ;;  %v219_v24 = vadd.f32 %v952_v8, %v111_v26 }
  0xb5   :  { %v329_v63 = vadd.f32 %v297_v30, %v221_v39  ;;  %v402_v0 = vmul.f32 %v916_v47, %v358_v51  ;;  %v403_v19 = vmul.f32 %v918_v48, %v358_v51  ;;  %v438_v32 = vadd.f32 %v406_v59, %v330_v33 }
  0xb6   :  { %v324_v60 = vadd.f32 %v292_v57, %v216_v45  ;;  %v325_v5 = vadd.f32 %v293_v58, %v217_v21  ;;  %v326_v11 = vadd.f32 %v294_v62, %v218_v23  ;;  %v327_v38 = vadd.f32 %v295_v12, %v219_v24 }
  0xb7   :  { %v439_v18 = vadd.f32 %v407_v44, %v331_v22  ;;  %v437_v42 = vadd.f32 %v405_v54, %v329_v63  ;;  %v510_v30 = vadd.f32 %v476_v31, %v430_v6  ;;  %v511_v33 = vadd.f32 %v476_v31, %v431_v7 }
  0xb8   :  { %v432_v28 = vadd.f32 %v400_v56, %v324_v60  ;;  %v433_v8 = vadd.f32 %v401_v20, %v325_v5  ;;  %v434_v2 = vadd.f32 %v402_v0, %v326_v11  ;;  %v435_v57 = vadd.f32 %v403_v19, %v327_v38 }
  0xb9   :  { %v1068_v26 = vpop.permute.xlu0 %470  ;;  %v486_v25 = vpop.permute.xlu1 %485  ;;  %v286_v24 = vmul.f32 %v864_v9, %v876_v15  ;;  %v508_v20 = vadd.f32 %v476_v31, %v1024_v13  ;;  %v509_v60 = vadd.f32 %v476_v31, %v1026_v14  ;;  %v543_v19 = vmax.f32 %v511_v33, 0.0 }
  0xba   :  { %v1070_v58 = vpop.permute.xlu2 %341  ;;  %v512_v34 = vadd.f32 %v998_v4, %v432_v28  ;;  %v513_v39 = vadd.f32 %v998_v4, %v433_v8  ;;  %v518_v62 = vadd.f32 %v486_v25, %v438_v32  ;;  %v519_v12 = vadd.f32 %v486_v25, %v439_v18 }
  0xbb   :  { %v386_v51 = vmul.f32 %v916_v47, %v1070_v58  ;;  %v387_v29 = vmul.f32 %v918_v48, %v1070_v58  ;;  %v516_v44 = vadd.f32 %v486_v25, %v436_v43  ;;  %v517_v45 = vadd.f32 %v486_v25, %v437_v42 }
  0xbc   :  { %v544_v37 = vmax.f32 %v512_v34, 0.0  ;;  %v545_v22 = vmax.f32 %v513_v39, 0.0  ;;  %v550_v59 = vmax.f32 %v518_v62, 0.0  ;;  %v551_v38 = vmax.f32 %v519_v12, 0.0 }
  0xbd   :  { %v514_v21 = vadd.f32 %v998_v4, %v434_v2  ;;  %v515_v23 = vadd.f32 %v998_v4, %v435_v57  ;;  %v548_v6 = vmax.f32 %v516_v44, 0.0  ;;  %v549_v7 = vmax.f32 %v517_v45, 0.0  ;;  %v1234_v4 = vld [vmem:[#allocation13_spill] sm:$0xff] }
  0xbe   :  { %v570_v54 = vadd.f32 %v545_v22, %v544_v37  ;;  %v605_v56 = vadd.f32 %v551_v38, %v550_v59  ;;  %v92_v42 = vmul.f32 %v816_v40, %v793_v27  ;;  %v542_v43 = vmax.f32 %v510_v30, 0.0  ;;  %v1235_v30 = vld [vmem:[#allocation11_spill] sm:$0xff]  ;;  %v1236_v59 = vld [vmem:[#allocation12_spill] sm:$0xff] }
  0xbf   :  { %v418_v2 = vadd.f32 %v386_v51, %v878_v16  ;;  %v419_v5 = vadd.f32 %v387_v29, %v1234_v4  ;;  %v573_v15 = vadd.f32 %v549_v7, %v548_v6  ;;  %v546_v63 = vmax.f32 %v514_v21, 0.0  ;;  %v1237_v21 = vld [vmem:[#allocation15_spill] sm:$0xff] }
  0xc0   :  { %571 = vadd.xlane.f32.xlu2 %v570_v54  ;;  %606 = vadd.xlane.f32.xlu1 %v605_v56  ;;  %v547_v0 = vmax.f32 %v515_v23, 0.0  ;;  %v316_v13 = vadd.f32 %v1042_v52, %v1029_v61  ;;  %v317_v14 = vadd.f32 %v1046_v53, %v1032_v50  ;;  %v318_v8 = vadd.f32 %v286_v24, %v1035_v3 }
  0xc1   :  { %v461_v11 = vpop.permute.xlu0 %460  ;;  %v319_v32 = vadd.f32 %v287_v49, %v1038_v55  ;;  %574 = vadd.xlane.f32.xlu0 %v573_v15  ;;  %v540_v18 = vmax.f32 %v508_v20, 0.0  ;;  %v541_v25 = vmax.f32 %v509_v60, 0.0  ;;  %v599_v50 = vadd.f32 %v543_v19, %v542_v43 }
  0xc2   :  { %v498_v31 = vadd.f32 %v461_v11, %v418_v2  ;;  %v499_v28 = vadd.f32 %v461_v11, %v419_v5  ;;  %v602_v52 = vadd.f32 %v547_v0, %v546_v63  ;;  %v93_v29 = vmul.f32 %v818_v41, %v793_v27  ;;  %v338_v2 = vpop.permute.xlu2 %337 }
  0xc3   :  { %v350_v16 = vpop.permute.xlu1 %349  ;;  %v168_v33 = vmul.f32 %v804_v35, %v1235_v30  ;;  %v169_v37 = vmul.f32 %v806_v36, %v1235_v30  ;;  %v276_v38 = vmul.f32 %v940_v1, %v1236_v59  ;;  %v277_v27 = vmul.f32 %v1237_v21, %v1236_v59 }
  0xc4   :  { %v392_v57 = vmul.f32 %v912_v46, %v350_v16  ;;  %v393_v34 = vmul.f32 %v914_v17, %v350_v16  ;;  %v394_v39 = vmul.f32 %v916_v47, %v350_v16  ;;  %v395_v61 = vmul.f32 %v918_v48, %v350_v16 }
  0xc5   :  { %v530_v53 = vmax.f32 %v498_v31, 0.0  ;;  %v531_v62 = vmax.f32 %v499_v28, 0.0  ;;  %v567_v23 = vadd.f32 %v541_v25, %v540_v18  ;;  %v200_v6 = vadd.f32 %v168_v33, %v92_v42  ;;  %v1238_v28 = vld [vmem:[#allocation14_spill] sm:$0xff]  ;;  %v1246_v33 = vld [vmem:[#allocation8_spill] sm:$0xff] }
  0xc6   :  { %v424_v12 = vadd.f32 %v392_v57, %v316_v13  ;;  %v425_v3 = vadd.f32 %v393_v34, %v317_v14  ;;  %v426_v51 = vadd.f32 %v394_v39, %v318_v8  ;;  %v427_v55 = vadd.f32 %v395_v61, %v319_v32  ;;  %v1239_v57 = vld [vmem:[#allocation20_spill] sm:$0xff]  ;;  %v1240_v61 = vld [vmem:[#allocation5_spill] sm:$0xff] }
  0xc7   :  { %v1106_v22 = vadd.f32 %v531_v62, %v530_v53  ;;  %v201_v7 = vadd.f32 %v169_v37, %v93_v29  ;;  %v384_v20 = vmul.f32 %v912_v46, %v1070_v58  ;;  %v385_v60 = vmul.f32 %v914_v17, %v1070_v58  ;;  %v1242_v62 = vld [vmem:[#allocation2_spill] sm:$0xff] }
  0xc8   :  { %603 = vadd.xlane.f32.xlu2 %v602_v52  ;;  %600 = vadd.xlane.f32.xlu1 %v599_v50  ;;  %v504_v44 = vadd.f32 %v1068_v26, %v424_v12  ;;  %v505_v45 = vadd.f32 %v1068_v26, %v425_v3  ;;  %v506_v24 = vadd.f32 %v1068_v26, %v426_v51  ;;  %v1241_v50 = vld [vmem:[#allocation6_spill] sm:$0xff]  ;;  %v1243_v51 = vld [vmem:[#allocation3_spill] sm:$0xff] }
  0xc9   :  { %v507_v49 = vadd.f32 %v1068_v26, %v427_v55  ;;  %568 = vadd.xlane.f32.xlu0 %v567_v23  ;;  %v308_v4 = vadd.f32 %v276_v38, %v200_v6  ;;  %v309_v5 = vadd.f32 %v277_v27, %v201_v7  ;;  %v280_v8 = vmul.f32 %v940_v1, %v1238_v28  ;;  %v1247_v38 = vld [vmem:[#allocation9_spill] sm:$0xff] }
  0xca   :  { %v536_v54 = vmax.f32 %v504_v44, 0.0  ;;  %v537_v56 = vmax.f32 %v505_v45, 0.0  ;;  %v538_v15 = vmax.f32 %v506_v24, 0.0  ;;  %v281_v58 = vmul.f32 %v1237_v21, %v1238_v28  ;;  %v334_v39 = vpop.permute.xlu2 %333  ;;  %v1248_v45 = vld [vmem:[#allocation10_spill] sm:$0xff] }
  0xcb   :  { %v346_v43 = vpop.permute.xlu1 %345  ;;  %v539_v63 = vmax.f32 %v507_v49, 0.0  ;;  %v416_v19 = vadd.f32 %v384_v20, %v308_v4  ;;  %v417_v26 = vadd.f32 %v385_v60, %v309_v5  ;;  %v282_v18 = vmul.f32 %v864_v9, %v1238_v28 }
  0xcc   :  { %v564_v0 = vadd.f32 %v537_v56, %v536_v54  ;;  %v283_v25 = vmul.f32 %v866_v10, %v1238_v28  ;;  %v88_v34 = vmul.f32 %v816_v40, %v1239_v57  ;;  %v90_v52 = vmul.f32 %v1240_v61, %v1239_v57  ;;  %v1244_v40 = vld [vmem:[#allocation4_spill] sm:$0xff] }
  0xcd   :  { %v596_v13 = vadd.f32 %v539_v63, %v538_v15  ;;  %v496_v42 = vadd.f32 %v461_v11, %v416_v19  ;;  %v497_v14 = vadd.f32 %v461_v11, %v417_v26  ;;  %v89_v11 = vmul.f32 %v818_v41, %v1239_v57  ;;  %v1245_v41 = vld [vmem:[#allocation7_spill] sm:$0xff] }
  0xce   :  { %v91_v53 = vmul.f32 %v1241_v50, %v1239_v57  ;;  %v164_v12 = vmul.f32 %v804_v35, %v1242_v62  ;;  %v165_v3 = vmul.f32 %v806_v36, %v1242_v62  ;;  %v166_v55 = vmul.f32 %v1243_v51, %v1242_v62 }
  0xcf   :  { %v528_v32 = vmax.f32 %v496_v42, 0.0  ;;  %v529_v16 = vmax.f32 %v497_v14, 0.0  ;;  %v167_v29 = vmul.f32 %v1244_v40, %v1242_v62  ;;  %v312_v30 = vadd.f32 %v280_v8, %v1245_v41  ;;  %v1250_v14 = vld [vmem:[#allocation17_spill] sm:$0xff]  ;;  %v1251_v8 = vld [vmem:[#allocation18_spill] sm:$0xff] }
  0xd0   :  { %565 = vadd.xlane.f32.xlu2 %v564_v0  ;;  %v313_v37 = vadd.f32 %v281_v58, %v1246_v33  ;;  %v314_v44 = vadd.f32 %v282_v18, %v1247_v38  ;;  %v315_v27 = vadd.f32 %v283_v25, %v1248_v45  ;;  %v196_v23 = vadd.f32 %v164_v12, %v88_v34 }
  0xd1   :  { %597 = vadd.xlane.f32.xlu0 %v596_v13  ;;  %v558_v59 = vadd.f32 %v529_v16, %v528_v32  ;;  %v197_v35 = vadd.f32 %v165_v3, %v89_v11  ;;  %v198_v24 = vadd.f32 %v166_v55, %v90_v52  ;;  %v199_v49 = vadd.f32 %v167_v29, %v91_v53  ;;  %v1249_v13 = vld [vmem:[#allocation16_spill] sm:$0xff]  ;;  %v1252_v32 = vld [vmem:[#allocation19_spill] sm:$0xff] }
  0xd2   :  { %v1149_v36 = vmul.f32 %v912_v46, %v338_v2  ;;  %v1152_v54 = vmul.f32 %v914_v17, %v338_v2  ;;  %v382_v56 = vmul.f32 %v916_v47, %v338_v2  ;;  %v383_v6 = vmul.f32 %v918_v48, %v338_v2 }
  0xd3   :  { %v376_v7 = vmul.f32 %v912_v46, %v334_v39  ;;  %v377_v20 = vmul.f32 %v914_v17, %v334_v39  ;;  %v390_v0 = vmul.f32 %v916_v47, %v346_v43  ;;  %v391_v19 = vmul.f32 %v918_v48, %v346_v43  ;;  %v451_v11 = vpop.permute.xlu2 %450 }
  0xd4   :  { %v230_v31 = vpop.permute.xlu1 %229  ;;  %v378_v26 = vmul.f32 %v916_v47, %v334_v39  ;;  %v379_v2 = vmul.f32 %v918_v48, %v334_v39  ;;  %v388_v18 = vmul.f32 %v912_v46, %v346_v43  ;;  %v389_v25 = vmul.f32 %v914_v17, %v346_v43 }
  0xd5   :  { %v272_v57 = vmul.f32 %v940_v1, %v230_v31  ;;  %v273_v34 = vmul.f32 %v1237_v21, %v230_v31  ;;  %v274_v52 = vmul.f32 %v864_v9, %v230_v31  ;;  %v275_v50 = vmul.f32 %v866_v10, %v230_v31 }
  0xd6   :  { %v422_v53 = vadd.f32 %v390_v0, %v314_v44  ;;  %v423_v62 = vadd.f32 %v391_v19, %v315_v27  ;;  %v421_v55 = vadd.f32 %v389_v25, %v313_v37 }
  0xd7   :  { %v304_v17 = vadd.f32 %v272_v57, %v196_v23  ;;  %v305_v43 = vadd.f32 %v273_v34, %v197_v35  ;;  %v307_v31 = vadd.f32 %v275_v50, %v199_v49 }
  0xd9   :  { %559 = vadd.xlane.f32.xlu0 %v558_v59 }
  0xdc   :  { %v226_v60 = vpop.permute.xlu1 %225 }
  0xdd   :  { %v268_v4 = vmul.f32 %v940_v1, %v226_v60  ;;  %v269_v5 = vmul.f32 %v1237_v21, %v226_v60  ;;  %v270_v15 = vmul.f32 %v864_v9, %v226_v60  ;;  %v271_v63 = vmul.f32 %v866_v10, %v226_v60 }
  0xde   :  { %v420_v1 = vadd.f32 %v388_v18, %v312_v30  ;;  %v306_v10 = vadd.f32 %v274_v52, %v198_v24 }
  0xdf   :  { %v300_v42 = vadd.f32 %v268_v4, %v1249_v13  ;;  %v301_v28 = vadd.f32 %v269_v5, %v1250_v14  ;;  %v302_v58 = vadd.f32 %v270_v15, %v1251_v8  ;;  %v303_v16 = vadd.f32 %v271_v63, %v1252_v32 }
  0xe0   :  { %v414_v37 = vadd.f32 %v382_v56, %v306_v10  ;;  %v415_v4 = vadd.f32 %v383_v6, %v307_v31  ;;  %v412_v5 = vadd.f32 %v1149_v36, %v304_v17  ;;  %v413_v15 = vadd.f32 %v1152_v54, %v305_v43  ;;  %v626_v36 = vld [vmem:[%s1199_s4] sm:$0xff] }
  0xe1   :  { %v410_v47 = vadd.f32 %v378_v26, %v302_v58  ;;  %v411_v61 = vadd.f32 %v379_v2, %v303_v16  ;;  %v408_v48 = vadd.f32 %v376_v7, %v300_v42  ;;  %v409_v39 = vadd.f32 %v377_v20, %v301_v28  ;;  %v625_v31 = vld [vmem:[%s1200_s3] sm:$0xff] }
  0xe3   :  { %v490_v12 = vadd.f32 %v451_v11, %v410_v47  ;;  %v491_v3 = vadd.f32 %v451_v11, %v411_v61  ;;  %v488_v46 = vadd.f32 %v451_v11, %v408_v48  ;;  %v489_v51 = vadd.f32 %v451_v11, %v409_v39 }
  0xe5   :  { %v466_v21 = vpop.permute.xlu1 %465  ;;  %v522_v40 = vmax.f32 %v490_v12, 0.0  ;;  %v523_v29 = vmax.f32 %v491_v3, 0.0  ;;  %v520_v41 = vmax.f32 %v488_v46, 0.0  ;;  %v521_v33 = vmax.f32 %v489_v51, 0.0 }
  0xe6   :  { %v502_v59 = vadd.f32 %v466_v21, %v422_v53  ;;  %v503_v38 = vadd.f32 %v466_v21, %v423_v62  ;;  %v500_v9 = vadd.f32 %v466_v21, %v420_v1  ;;  %v501_v45 = vadd.f32 %v466_v21, %v421_v55 }
  0xe7   :  { %v584_v44 = vadd.f32 %v523_v29, %v522_v40  ;;  %v552_v27 = vadd.f32 %v521_v33, %v520_v41 }
  0xe8   :  { %v534_v7 = vmax.f32 %v502_v59, 0.0  ;;  %v535_v20 = vmax.f32 %v503_v38, 0.0  ;;  %v532_v60 = vmax.f32 %v500_v9, 0.0  ;;  %v533_v23 = vmax.f32 %v501_v45, 0.0 }
  0xea   :  { %v593_v35 = vadd.f32 %v535_v20, %v534_v7  ;;  %v561_v30 = vadd.f32 %v533_v23, %v532_v60 }
  0xec   :  { %594 = vadd.xlane.f32.xlu2 %v593_v35  ;;  %562 = vadd.xlane.f32.xlu1 %v561_v30 }
  0xed   :  { %v456_v63 = vpop.permute.xlu1 %455 }
  0xee   :  { %v494_v0 = vadd.f32 %v456_v63, %v414_v37  ;;  %v495_v24 = vadd.f32 %v456_v63, %v415_v4  ;;  %v492_v49 = vadd.f32 %v456_v63, %v412_v5  ;;  %v493_v19 = vadd.f32 %v456_v63, %v413_v15 }
  0xf0   :  { %v526_v26 = vmax.f32 %v494_v0, 0.0  ;;  %v527_v2 = vmax.f32 %v495_v24, 0.0  ;;  %v524_v13 = vmax.f32 %v492_v49, 0.0  ;;  %v525_v42 = vmax.f32 %v493_v19, 0.0 }
  0xf2   :  { %v587_v14 = vadd.f32 %v527_v2, %v526_v26  ;;  %v555_v28 = vadd.f32 %v525_v42, %v524_v13 }
  0xf4   :  { %591 = vadd.xlane.f32.xlu1 %v1106_v22  ;;  %588 = vadd.xlane.f32.xlu0 %v587_v14 }
  0xf5   :  { %556 = vadd.xlane.f32.xlu2 %v555_v28 }
  0xfc   :  { %553 = vadd.xlane.f32.xlu1 %v552_v27 }
  0xfd   :  { %585 = vadd.xlane.f32.xlu2 %v584_v44 }
 0x108   :  { %629 = vperm.xlu0 %680, %v626_v36  }
 0x133   :  { %v572_v54 = vpop.xlane.xlu2 %571  ;;  %v607_v56 = vpop.xlane.xlu1 %606 }
 0x134   :  { %v615_v6 = vmul.f32 0.00390625, %v607_v56  ;;  %v575_v8 = vpop.xlane.xlu0 %574  ;;  %v582_v18 = vmul.f32 0.00390625, %v572_v54 }
 0x135   :  { %v583_v58 = vmul.f32 0.00390625, %v575_v8 }
 0x137   :  { %v624_v32 = vsel %vm616_vm0, %v583_v58, %v615_v6 }
 0x138   :  { %644 = vmatpush.msra.mxu0 %v624_v32 }
 0x13b   :  { %v604_v16 = vpop.xlane.xlu2 %603  ;;  %v601_v22 = vpop.xlane.xlu1 %600 }
 0x13c   :  { %v614_v25 = vmul.f32 0.00390625, %v604_v16  ;;  %v613_v57 = vmul.f32 0.00390625, %v601_v22  ;;  %v569_v34 = vpop.xlane.xlu0 %568 }
 0x13d   :  { %v581_v47 = vmul.f32 0.00390625, %v569_v34 }
 0x13e   :  { %v623_v11 = vsel %vm616_vm0, %v582_v18, %v614_v25 }
 0x13f   :  { %645 = vmatpush.msra.mxu0 %v623_v11  ;;  %v622_v61 = vsel %vm616_vm0, %v581_v47, %v613_v57 }
 0x141   :  { %646 = vmatpush.msra.mxu0 %v622_v61 }
 0x143   :  { %v566_v48 = vpop.xlane.xlu2 %565 }
 0x144   :  { %v580_v39 = vmul.f32 0.00390625, %v566_v48  ;;  %v598_v52 = vpop.xlane.xlu0 %597 }
 0x145   :  { %v612_v50 = vmul.f32 0.00390625, %v598_v52 }
 0x147   :  { %v621_v53 = vsel %vm616_vm0, %v580_v39, %v612_v50 }
 0x148   :  { %647 = vmatpush.msra.mxu0 %v621_v53 }
 0x14c   :  { %v560_v62 = vpop.xlane.xlu0 %559 }
 0x14d   :  { %v578_v55 = vmul.f32 0.00390625, %v560_v62 }
 0x15f   :  { %v595_v12 = vpop.xlane.xlu2 %594  ;;  %v563_v3 = vpop.xlane.xlu1 %562 }
 0x160   :  { %v611_v46 = vmul.f32 0.00390625, %v595_v12  ;;  %v579_v51 = vmul.f32 0.00390625, %v563_v3 }
 0x162   :  { %v620_v17 = vsel %vm616_vm0, %v579_v51, %v611_v46 }
 0x163   :  { %648 = vmatpush.msra.mxu0 %v620_v17 }
 0x167   :  { %v592_v43 = vpop.xlane.xlu1 %591  ;;  %v589_v1 = vpop.xlane.xlu0 %588 }
 0x168   :  { %v610_v21 = vmul.f32 0.00390625, %v592_v43  ;;  %v609_v40 = vmul.f32 0.00390625, %v589_v1  ;;  %v557_v29 = vpop.xlane.xlu2 %556 }
 0x169   :  { %v577_v41 = vmul.f32 0.00390625, %v557_v29 }
 0x16a   :  { %v619_v33 = vsel %vm616_vm0, %v578_v55, %v610_v21 }
 0x16b   :  { %649 = vmatpush.msra.mxu0 %v619_v33  ;;  %v618_v59 = vsel %vm616_vm0, %v577_v41, %v609_v40 }
 0x16d   :  { %650 = vmatpush.msra.mxu0 %v618_v59 }
 0x16f   :  { %v554_v38 = vpop.xlane.xlu1 %553 }
 0x170   :  { %v586_v9 = vpop.xlane.xlu2 %585  ;;  %v576_v45 = vmul.f32 0.00390625, %v554_v38 }
 0x171   :  { %v608_v10 = vmul.f32 0.00390625, %v586_v9 }
 0x173   :  { %v617_v44 = vsel %vm616_vm0, %v576_v45, %v608_v10 }
 0x174   :  { %651 = vmatpush.msra.mxu0 %v617_v44 }
 0x175   :  { %662 = vmatmul.msk.f32.vlgmr.msra.gmra.mxu0 %vm632_vm1, %v625_v31 }
 0x17a   :  { %v630_v27 = vpop.permute.xlu0 %629 }
 0x1f2   :  { %v653_v7 = vpop.f32.mrf.mxu0 }
 0x1f3   :  { %v654_v20 = vadd.f32 %v653_v7, %v630_v27 }
 0x1f5   :  { %657 = vst.msk [vmem:[%s1201_s5] sm:$0xff] %vm656_vm2, %v654_v20 }

</bundles_post_ra>
